<compile_context>
chip_gen: v7x
topology: tpu7x:2x2x1
jax: 0.10.0
libtpu: 0.0.40
codegen_flags: <defaults>
</compile_context>

<pallas_src>
import functools
import math

import jax
import jax.numpy as jnp
from jax import lax
from jax.experimental import pallas as pl
from jax.experimental.pallas import tpu as pltpu

_NEG_BIG = -1e30          # finite "-inf" sentinel (avoids inf/NaN in the rescale)
_VMEM_LIMIT = 32 * 1024 * 1024   # raise v5e's 16 MiB scoped default; safe everywhere


def _round_up(n, m):
    return ((n + m - 1) // m) * m


# ---------------------------------------------------------------------------
# Kernels
# ---------------------------------------------------------------------------

def _fc1_relu_norm_kernel(x_ref, w_ref, b_ref, h_ref, hn_ref):
    """h = relu(x @ W1 + b1); hn = L2-normalized h (bf16) for the cosine operand."""
    y = jnp.dot(x_ref[...], w_ref[...], preferred_element_type=jnp.float32)
    y = jnp.maximum(y + b_ref[...], 0.0)
    h_ref[...] = y.astype(h_ref.dtype)
    # F.normalize(eps=1e-12) semantics: x / max(||x||, 1e-12)
    inv_n = lax.rsqrt(jnp.maximum(jnp.sum(y * y, axis=1, keepdims=True), 1e-24))
    hn_ref[...] = (y * inv_n).astype(hn_ref.dtype)


def _agnn_online_step(hn_rows_ref, hn_cols_ref, h_cols_ref, adj_ref,
                      m_sc, l_sc, acc_sc, beta):
    """One column tile of the masked online softmax + aggregation.

    Rows/cols are pre-L2-normalized (normalization hoisted out of this loop).
    """
    # cos(x_i, x_j): bf16 MXU operands, f32 accumulation, contract feature axis.
    s = lax.dot_general(hn_rows_ref[...], hn_cols_ref[...],
                        (((1,), (1,)), ((), ())),
                        preferred_element_type=jnp.float32)          # (TR, TC)
    if beta != 1.0:
        s = s * beta

    mask = adj_ref[...] != 0                 # integer compare, no i8->f32 convert
    s_m = jnp.where(mask, s, _NEG_BIG)       # single select, reused for max & exp

    m_cur = jnp.max(s_m, axis=1, keepdims=True)
    m_new = jnp.maximum(m_sc[...], m_cur)
    alpha = jnp.exp(m_sc[...] - m_new)
    e = jnp.exp(s_m - m_new)                 # masked entries underflow to exactly 0

    l_sc[...] = alpha * l_sc[...] + jnp.sum(e, axis=1, keepdims=True)
    # bf16 MXU operands (halves MXU input bandwidth), f32 accumulation.
    acc_sc[...] = alpha * acc_sc[...] + lax.dot_general(
        e.astype(jnp.bfloat16), h_cols_ref[...].astype(jnp.bfloat16),
        (((1,), (0,)), ((), ())), preferred_element_type=jnp.float32)
    m_sc[...] = m_new


def _agnn_prop_kernel(hn_rows_ref, hn_cols_ref, h_cols_ref, adj_ref,
                      o_ref, on_ref, m_sc, l_sc, acc_sc, *, beta):
    """out_i = sum_j softmax_j(beta * cos(x_i, x_j)) * x_j over adj neighbors.

    Also emits the L2-normalized output (bf16) so the next prop layer does not
    have to re-normalize its columns.
    """
    kv = pl.program_id(1)

    @pl.when(kv == 0)
    def _():
        m_sc[...] = jnp.full_like(m_sc, _NEG_BIG)
        l_sc[...] = jnp.zeros_like(l_sc)
        acc_sc[...] = jnp.zeros_like(acc_sc)

    _agnn_online_step(hn_rows_ref, hn_cols_ref, h_cols_ref, adj_ref,
                      m_sc, l_sc, acc_sc, beta)

    @pl.when(kv == pl.num_programs(1) - 1)
    def _():
        inv_l = pl.reciprocal(jnp.maximum(l_sc[...], 1e-30), approx=True)
        out = acc_sc[...] * inv_l
        o_ref[...] = out.astype(o_ref.dtype)
        inv_n = lax.rsqrt(jnp.maximum(jnp.sum(out * out, axis=1, keepdims=True),
                                      1e-24))
        on_ref[...] = (out * inv_n).astype(on_ref.dtype)


def _agnn_prop_fc_lsm_kernel(hn_rows_ref, hn_cols_ref, h_cols_ref, adj_ref,
                             w_ref, b_ref, o_ref, m_sc, l_sc, acc_sc,
                             *, beta, num_classes):
    """AGNN prop fused with fc2 + log_softmax (lane-dense padded class dim)."""
    kv = pl.program_id(1)

    @pl.when(kv == 0)
    def _():
        m_sc[...] = jnp.full_like(m_sc, _NEG_BIG)
        l_sc[...] = jnp.zeros_like(l_sc)
        acc_sc[...] = jnp.zeros_like(acc_sc)

    _agnn_online_step(hn_rows_ref, hn_cols_ref, h_cols_ref, adj_ref,
                      m_sc, l_sc, acc_sc, beta)

    @pl.when(kv == pl.num_programs(1) - 1)
    def _():
        inv_l = pl.reciprocal(jnp.maximum(l_sc[...], 1e-30), approx=True)
        h = acc_sc[...] * inv_l                                     # (TR, H)
        y = jnp.dot(h, w_ref[...], preferred_element_type=jnp.float32) + b_ref[...]
        # Mask padded classes out of max / LSE.
        col = lax.broadcasted_iota(jnp.int32, y.shape, 1)
        y = jnp.where(col < num_classes, y, _NEG_BIG)
        mmax = jnp.max(y, axis=1, keepdims=True)
        lse = jnp.log(jnp.sum(jnp.exp(y - mmax), axis=1, keepdims=True)) + mmax
        o_ref[...] = (y - lse).astype(o_ref.dtype)


# ---------------------------------------------------------------------------
# Wrappers
# ---------------------------------------------------------------------------

def fc1_relu_norm(x_bf16, w_bf16, b, *, row_tile):
    n, f = x_bf16.shape
    h = w_bf16.shape[1]
    return pl.pallas_call(
        _fc1_relu_norm_kernel,
        out_shape=(jax.ShapeDtypeStruct((n, h), jnp.float32),
                   jax.ShapeDtypeStruct((n, h), jnp.bfloat16)),
        grid_spec=pltpu.PrefetchScalarGridSpec(
            num_scalar_prefetch=0,
            grid=(n // row_tile,),
            in_specs=[
                pl.BlockSpec((row_tile, f), lambda i: (i, 0)),
                pl.BlockSpec((f, h), lambda i: (0, 0)),
                pl.BlockSpec((1, h), lambda i: (0, 0)),
            ],
            out_specs=[
                pl.BlockSpec((row_tile, h), lambda i: (i, 0)),
                pl.BlockSpec((row_tile, h), lambda i: (i, 0)),
            ],
        ),
        compiler_params=pltpu.CompilerParams(
            dimension_semantics=("parallel",),
            vmem_limit_bytes=_VMEM_LIMIT),
    )(x_bf16, w_bf16, b)


def agnn_prop(h, h_norm, adj_i8, *, beta, row_tile, col_tile):
    n, d = h.shape
    kernel = functools.partial(_agnn_prop_kernel, beta=beta)
    return pl.pallas_call(
        kernel,
        out_shape=(jax.ShapeDtypeStruct((n, d), jnp.float32),
                   jax.ShapeDtypeStruct((n, d), jnp.bfloat16)),
        grid_spec=pltpu.PrefetchScalarGridSpec(
            num_scalar_prefetch=0,
            grid=(n // row_tile, n // col_tile),
            in_specs=[
                pl.BlockSpec((row_tile, d), lambda i, j: (i, 0)),        # hn rows
                pl.BlockSpec((col_tile, d), lambda i, j: (j, 0)),        # hn cols
                pl.BlockSpec((col_tile, d), lambda i, j: (j, 0)),        # h cols (values)
                pl.BlockSpec((row_tile, col_tile), lambda i, j: (i, j)),  # int8 adj tile
            ],
            out_specs=[
                pl.BlockSpec((row_tile, d), lambda i, j: (i, 0)),
                pl.BlockSpec((row_tile, d), lambda i, j: (i, 0)),
            ],
            scratch_shapes=[
                pltpu.VMEM((row_tile, 1), jnp.float32),   # running max
                pltpu.VMEM((row_tile, 1), jnp.float32),   # running denom
                pltpu.VMEM((row_tile, d), jnp.float32),   # accumulator
            ],
        ),
        compiler_params=pltpu.CompilerParams(
            dimension_semantics=("parallel", "arbitrary"),
            vmem_limit_bytes=_VMEM_LIMIT),
    )(h_norm, h_norm, h, adj_i8)


def agnn_prop_fc_logsoftmax(h, h_norm, adj_i8, w2p, b2p, *, beta, num_classes,
                            row_tile, col_tile):
    n, d = h.shape
    c_pad = w2p.shape[1]
    kernel = functools.partial(_agnn_prop_fc_lsm_kernel, beta=beta,
                               num_classes=num_classes)
    return pl.pallas_call(
        kernel,
        out_shape=jax.ShapeDtypeStruct((n, c_pad), jnp.float32),
        grid_spec=pltpu.PrefetchScalarGridSpec(
            num_scalar_prefetch=0,
            grid=(n // row_tile, n // col_tile),
            in_specs=[
                pl.BlockSpec((row_tile, d), lambda i, j: (i, 0)),
                pl.BlockSpec((col_tile, d), lambda i, j: (j, 0)),
                pl.BlockSpec((col_tile, d), lambda i, j: (j, 0)),
                pl.BlockSpec((row_tile, col_tile), lambda i, j: (i, j)),
                pl.BlockSpec((d, c_pad), lambda i, j: (0, 0)),
                pl.BlockSpec((1, c_pad), lambda i, j: (0, 0)),
            ],
            out_specs=pl.BlockSpec((row_tile, c_pad), lambda i, j: (i, 0)),
            scratch_shapes=[
                pltpu.VMEM((row_tile, 1), jnp.float32),
                pltpu.VMEM((row_tile, 1), jnp.float32),
                pltpu.VMEM((row_tile, d), jnp.float32),
            ],
        ),
        compiler_params=pltpu.CompilerParams(
            dimension_semantics=("parallel", "arbitrary"),
            vmem_limit_bytes=_VMEM_LIMIT),
    )(h_norm, h_norm, h, adj_i8, w2p, b2p)


def net_forward(x, adj_i8, params, *, row_tile=256, col_tile=512):
    """fc1 -> relu -> AGNNProp -> (AGNNProp + fc2 + log_softmax).  Eval mode."""
    n = x.shape[0]
    c = params["w2"].shape[1]

    # Pad nodes so both tile sizes divide evenly; padded adj rows/cols are 0 (fully
    # masked) so they never contribute, and padded output rows are sliced off below.
    n_pad = _round_up(n, math.lcm(row_tile, col_tile))
    if n_pad != n:
        x = jnp.pad(x, ((0, n_pad - n), (0, 0)))
        adj_i8 = jnp.pad(adj_i8, ((0, n_pad - n), (0, n_pad - n)))

    # bf16 input features / fc1 weights: halves the largest HBM read and keeps the
    # MXU in its native bf16 path (f32 accumulation inside the kernel).
    x_bf16 = x.astype(jnp.bfloat16)
    w1_bf16 = params["w1"].astype(jnp.bfloat16)

    # Lane-dense classifier: pad class dim to a multiple of 128, mask inside kernel.
    c_pad = _round_up(c, 128)
    w2p = jnp.pad(params["w2"], ((0, 0), (0, c_pad - c)))
    b2p = jnp.pad(params["b2"], ((0, 0), (0, c_pad - c)))

    h, hn = fc1_relu_norm(x_bf16, w1_bf16, params["b1"], row_tile=row_tile)
    h, hn = agnn_prop(h, hn, adj_i8, beta=float(params["beta1"]),
                      row_tile=row_tile, col_tile=col_tile)
    out = agnn_prop_fc_logsoftmax(h, hn, adj_i8, w2p, b2p,
                                  beta=float(params["beta2"]), num_classes=c,
                                  row_tile=row_tile, col_tile=col_tile)
    return out[:n, :c]


# ---------------------------------------------------------------------------
# Main
# ---------------------------------------------------------------------------

if __name__ == "__main__":
    N, F, H, C = 256, 64, 16, 7   # small synthetic stand-ins for Cora sizes

    key = jax.random.PRNGKey(0)
    kx, kw1, kb1, kw2, kb2 = jax.random.split(key, 5)

    # Node features (NormalizeFeatures -> nonnegative rows; keep values >= 0).
    x = jax.random.uniform(kx, (N, F), jnp.float32)

    # Deterministic ring graph + self-loops as a dense int8 adjacency mask.
    idx = jnp.arange(N)
    adj = jnp.zeros((N, N), jnp.int8)
    adj = adj.at[idx, idx].set(1)
    adj = adj.at[idx, (idx + 1) % N].set(1)
    adj = adj.at[idx, (idx - 1) % N].set(1)

    # Deterministic parameter init (Linear-like uniform fan-in scaling).
    def lin_init(kw, kb, fan_in, fan_out):
        bound = 1.0 / float(fan_in) ** 0.5
        w = jax.random.uniform(kw, (fan_in, fan_out), jnp.float32, -bound, bound)
        b = jax.random.uniform(kb, (1, fan_out), jnp.float32, -bound, bound)
        return w, b

    w1, b1 = lin_init(kw1, kb1, F, H)
    w2, b2 = lin_init(kw2, kb2, H, C)

    params = dict(w1=w1, b1=b1, w2=w2, b2=b2, beta1=1.0, beta2=1.0)

    out = jax.block_until_ready(net_forward(x, adj, params))
    assert out.shape == (N, C)
    # log_softmax rows should sum to ~1 in probability space
    assert bool(jnp.all(jnp.abs(jnp.sum(jnp.exp(out), axis=1) - 1.0) < 1e-4))
    print("KERNEL_OK")
</pallas_src>

<mosaic_0001>
module attributes {stable_mosaic.version = 11 : i64} {
  func.func @_fc1_relu_norm_kernel(%arg0: i32, %arg1: memref<256x64xbf16, #tpu.memory_space<vmem>>, %arg2: memref<64x16xbf16, #tpu.memory_space<vmem>>, %arg3: memref<1x16xf32, #tpu.memory_space<vmem>>, %arg4: memref<256x16xf32, #tpu.memory_space<vmem>>, %arg5: memref<256x16xbf16, #tpu.memory_space<vmem>>) attributes {dimension_semantics = [#tpu.dimension_semantics<parallel>], iteration_bounds = array<i64: 2>, scalar_prefetch = 0 : i64, scratch_operands = 0 : i64, tpu.core_type = #tpu.core_type<tc>, window_params = [{transform_indices = @transform_0, window_bounds = array<i64: 256, 64>}, {pipeline_mode = #tpu.pipeline_mode<synchronous>, transform_indices = @transform_1, window_bounds = array<i64: 64, 16>}, {pipeline_mode = #tpu.pipeline_mode<synchronous>, transform_indices = @transform_2, window_bounds = array<i64: 1, 16>}, {transform_indices = @transform_3, window_bounds = array<i64: 256, 16>}, {transform_indices = @transform_4, window_bounds = array<i64: 256, 16>}]} {
    %c0 = arith.constant 0 : index
    %c0_0 = arith.constant 0 : index
    %0 = vector.load %arg1[%c0, %c0_0] : memref<256x64xbf16, #tpu.memory_space<vmem>>, vector<256x64xbf16>
    %c0_1 = arith.constant 0 : index
    %c0_2 = arith.constant 0 : index
    %1 = vector.load %arg2[%c0_1, %c0_2] : memref<64x16xbf16, #tpu.memory_space<vmem>>, vector<64x16xbf16>
    %cst = arith.constant dense<0.000000e+00> : vector<256x16xf32>
    %2 = tpu.matmul %0, %1, %cst {dimension_numbers = #tpu.dot_dimension_numbers<[1], [0], [0], [1], [0, 0, 1, 1], [], []>} : vector<256x64xbf16>, vector<64x16xbf16>, vector<256x16xf32> -> vector<256x16xf32>
    %c0_3 = arith.constant 0 : index
    %c0_4 = arith.constant 0 : index
    %3 = vector.load %arg3[%c0_3, %c0_4] : memref<1x16xf32, #tpu.memory_space<vmem>>, vector<1x16xf32>
    %4 = vector.broadcast %3 : vector<1x16xf32> to vector<256x16xf32>
    %5 = arith.addf %2, %4 : vector<256x16xf32>
    %cst_5 = arith.constant 0.000000e+00 : f32
    %6 = vector.broadcast %cst_5 : f32 to vector<256x16xf32>
    %7 = arith.maximumf %5, %6 : vector<256x16xf32>
    %c0_6 = arith.constant 0 : index
    %c0_7 = arith.constant 0 : index
    %8 = vector.load %arg4[%c0_6, %c0_7] : memref<256x16xf32, #tpu.memory_space<vmem>>, vector<256x16xf32>
    tpu.vector_store %arg4[%c0_6, %c0_7], %7 {strides = array<i32>} : memref<256x16xf32, #tpu.memory_space<vmem>>, vector<256x16xf32>,
    %9 = arith.mulf %7, %7 : vector<256x16xf32>
    %cst_8 = arith.constant dense<0.000000e+00> : vector<256xf32>
    %10 = vector.multi_reduction <add>, %9, %cst_8 [1] : vector<256x16xf32> to vector<256xf32>
    %11 = vector.shape_cast %10 : vector<256xf32> to vector<256x1xf32>
    %cst_9 = arith.constant 1.000000e-24 : f32
    %12 = vector.broadcast %cst_9 : f32 to vector<256x1xf32>
    %13 = arith.maximumf %11, %12 : vector<256x1xf32>
    %14 = math.rsqrt %13 : vector<256x1xf32>
    %15 = vector.broadcast %14 : vector<256x1xf32> to vector<256x16xf32>
    %16 = arith.mulf %7, %15 : vector<256x16xf32>
    %17 = arith.truncf %16 : vector<256x16xf32> to vector<256x16xbf16>
    %c0_10 = arith.constant 0 : index
    %c0_11 = arith.constant 0 : index
    %18 = vector.load %arg5[%c0_10, %c0_11] : memref<256x16xbf16, #tpu.memory_space<vmem>>, vector<256x16xbf16>
    tpu.vector_store %arg5[%c0_10, %c0_11], %17 {strides = array<i32>} : memref<256x16xbf16, #tpu.memory_space<vmem>>, vector<256x16xbf16>,
    return
  }
  func.func @transform_0(%arg0: i32) -> (i32, i32) {
    %c0_i32 = arith.constant 0 : i32
    %c0_i32_0 = arith.constant 0 : i32
    return %arg0, %c0_i32 : i32, i32
  }
  func.func @transform_1(%arg0: i32) -> (i32, i32) {
    %c0_i32 = arith.constant 0 : i32
    %c0_i32_0 = arith.constant 0 : i32
    %c0_i32_1 = arith.constant 0 : i32
    return %c0_i32, %c0_i32_0 : i32, i32
  }
  func.func @transform_2(%arg0: i32) -> (i32, i32) {
    %c0_i32 = arith.constant 0 : i32
    %c0_i32_0 = arith.constant 0 : i32
    %c0_i32_1 = arith.constant 0 : i32
    return %c0_i32, %c0_i32_0 : i32, i32
  }
  func.func @transform_3(%arg0: i32) -> (i32, i32) {
    %c0_i32 = arith.constant 0 : i32
    %c0_i32_0 = arith.constant 0 : i32
    return %arg0, %c0_i32 : i32, i32
  }
  func.func @transform_4(%arg0: i32) -> (i32, i32) {
    %c0_i32 = arith.constant 0 : i32
    %c0_i32_0 = arith.constant 0 : i32
    return %arg0, %c0_i32 : i32, i32
  }
}

</mosaic_0001>

<bundles_post_ra>
// kernel: tpu_custom_call.1
= control target key start
LH: loop header
LB: loop body
LE: loop exit
PB: predicated region body
PF: predicated region fallthrough
CT: control target
= control target key end

     0   :  { %s1424_s15 = smov 0   ;;  %s1891_s0 = inlined_call_operand.vmem [shape: bf16[512,64], index: 0, kind: input, shape index: {}]   ;;  %s1892_s1 = inlined_call_operand.vmem [shape: bf16[64,16], index: 1, kind: input, shape index: {}]   ;;  %s1893_s2 = inlined_call_operand.vmem [shape: f32[1,16], index: 2, kind: input, shape index: {}]   ;;  %s1894_s3 = inlined_call_operand.vmem [shape: f32[512,16], index: 3, kind: output, shape index: {0}]   ;;  %s1895_s4 = inlined_call_operand.vmem [shape: bf16[512,16], index: 4, kind: output, shape index: {1}]  }
   0x1 LB: > { %s1117_s16 = sadd.s32 4294967295, %s1397_s15   ;;  %p1121_p0 = scmp.ge.s32.totalorder %s1397_s15, 1  ;;  %s1397_s15 = sphi %s1424_s15, %s15_s15  }
   0x2   : > { %p166_p1 = scmp.lt.s32.totalorder %s1397_s15, 3 }
   0x4   : > { %p167_p2 = pnand %p1121_p0, %p166_p1 }
   0x5   : > { %v1307_v0 = vld [vmem:[%s1892_s1] sm:$0xff] (!%p167_p2)   ;;  %s1122_s19 = sshll.u32 (!%p167_p2), %s1117_s16, 5  ;;  %v1308_v1 = vld [vmem:[%s1892_s1 + $0x8] sm:$0xff] (!%p167_p2)   ;;  %v1309_v2 = vld [vmem:[%s1892_s1 + $0x10] sm:$0xff] (!%p167_p2)   ;;  %vm367_vm0 = vcmask (!%p167_p2), 523264   ;;  %vm609_vm1 = vcmask (!%p167_p2), 130048  }
   0x6   : > { %170 = sbr.rel (%p167_p2) target bundleno = 462 (0x1ce), region = 32  ;;  %p198_p3 = scmp.lt.s32.totalorder (!%p167_p2), %s1122_s19, 63  ;;  %1251 = vmatprep.subr.bf16.mxu0 (!%p167_p2), %v1307_v0  ;;  %1291 = vmatprep.subr.bf16.mxu1 (!%p167_p2), %v1307_v0  ;;  %v1310_v3 = vld [vmem:[%s1892_s1 + $0x18] sm:$0xff] (!%p167_p2)   ;;  %v1489_v20 = vld [vmem:[%s1893_s2] ss:$0 sm:$0xff] (!%p167_p2)  ;;  %vm994_vm2 = vcmask (!%p167_p2), 125952  }
   0x7   : > { %1252 = vmatpush3.bf16.msra.mxu0 (!%p167_p2), %v1307_v0  ;;  %1295 = vmatpush3.bf16.msra.mxu1 (!%p167_p2), %v1307_v0 }
   0x8   : > { %1253 = vmatprep.subr.bf16.mxu0 (!%p167_p2), %v1308_v1  ;;  %1292 = vmatprep.subr.bf16.mxu1 (!%p167_p2), %v1308_v1 }
   0xb   : > { %1254 = vmatpush3.bf16.msra.mxu0 (!%p167_p2), %v1308_v1  ;;  %1296 = vmatpush3.bf16.msra.mxu1 (!%p167_p2), %v1308_v1 }
   0xc   : > { %1255 = vmatprep.subr.bf16.mxu0 (!%p167_p2), %v1309_v2  ;;  %1293 = vmatprep.subr.bf16.mxu1 (!%p167_p2), %v1309_v2 }
   0xd   : > { %s1897_s19 = smov (!%p198_p3, %s1122_s19), 63 }
   0xe   : > { %s1123_s24 = sshll.u32 %s1897_s19, 2  ;;  %s1125_s6 = sshll.u32 %s1897_s19, 3 }
   0xf   : > { %s1452_s29 = scalar_lea.vmem %s1891_s0, %s1123_s24  ;;  %1256 = vmatpush3.bf16.msra.mxu0 %v1309_v2  ;;  %1297 = vmatpush3.bf16.msra.mxu1 %v1309_v2  ;;  %s1497_s9 = scalar_lea.vmem %s1894_s3, %s1125_s6 }
  0x10   : > { %v1311_v4 = vld [vmem:[%s1452_s29] sm:$0xff]   ;;  %1257 = vmatprep.subr.bf16.mxu0 %v1310_v3  ;;  %1294 = vmatprep.subr.bf16.mxu1 %v1310_v3  ;;  %v1313_v6 = vld [vmem:[%s1452_s29 + $0x8] sm:$0xff]   ;;  %v1315_v8 = vld [vmem:[%s1452_s29 + $0x10] sm:$0xff]   ;;  %s1791_s12 = scalar_lea.vmem %s1895_s4, %s1123_s24 }
  0x11   : > { %v1312_v5 = vld [vmem:[%s1452_s29 + $0x40] sm:$0xff]   ;;  %1259 = vmatprep.mubr.msk.bf16.mxu0 %vm367_vm0, %v1311_v4  ;;  %v1314_v7 = vld [vmem:[%s1452_s29 + $0x48] sm:$0xff]   ;;  %v1317_v9 = vld [vmem:[%s1452_s29 + $0x50] sm:$0xff]  }
  0x12   : > { %1275 = vmatprep.mubr.msk.bf16.mxu1 %vm367_vm0, %v1312_v5  ;;  %v1316_v10 = vld [vmem:[%s1452_s29 + $0x18] sm:$0xff]   ;;  %v1319_v12 = vld [vmem:[%s1452_s29 + $0x20] sm:$0xff]   ;;  %v1320_v14 = vld [vmem:[%s1452_s29 + $0x28] sm:$0xff]  }
  0x13   : > { %1258 = vmatpush3.bf16.msra.mxu0 %v1310_v3  ;;  %1298 = vmatpush3.bf16.msra.mxu1 %v1310_v3  ;;  %v1318_v11 = vld [vmem:[%s1452_s29 + $0x58] sm:$0xff]   ;;  %v1321_v13 = vld [vmem:[%s1452_s29 + $0x60] sm:$0xff]   ;;  %v1322_v15 = vld [vmem:[%s1452_s29 + $0x68] sm:$0xff]  }
  0x14   : > { %v1323_v16 = vld [vmem:[%s1452_s29 + $0x30] sm:$0xff]   ;;  %v1324_v18 = vld [vmem:[%s1452_s29 + $0x38] sm:$0xff]  }
  0x15   : > { %v1325_v17 = vld [vmem:[%s1452_s29 + $0x70] sm:$0xff]   ;;  %v1326_v19 = vld [vmem:[%s1452_s29 + $0x78] sm:$0xff]  }
  0x16   : > { %1260 = vmatmul.mubr.msk.bf16.vlgmr.msra.gmra.mrb[0].mxu0 %vm367_vm0, %v1313_v6  ;;  %1276 = vmatmul.mubr.msk.bf16.vlgmr.msra.gmra.mrb[0].mxu1 %vm367_vm0, %v1314_v7 }
  0x17   : > { %1263 = vmatprep.mubr.msk.bf16.mxu0 %vm367_vm0, %v1315_v8  ;;  %1279 = vmatprep.mubr.msk.bf16.mxu1 %vm367_vm0, %v1317_v9 }
  0x1e   : > { %1264 = vmatmul.mubr.msk.bf16.gmra.mrb[4].mxu0 %vm367_vm0, %v1316_v10  ;;  %1280 = vmatmul.mubr.msk.bf16.gmra.mrb[4].mxu1 %vm367_vm0, %v1318_v11 }
  0x1f   : > { %1267 = vmatprep.mubr.msk.bf16.mxu0 %vm367_vm0, %v1319_v12  ;;  %1283 = vmatprep.mubr.msk.bf16.mxu1 %vm367_vm0, %v1321_v13 }
  0x26   : > { %1268 = vmatmul.mubr.msk.bf16.gmra.mrb[8].mxu0 %vm367_vm0, %v1320_v14  ;;  %1284 = vmatmul.mubr.msk.bf16.gmra.mrb[8].mxu1 %vm367_vm0, %v1322_v15 }
  0x27   : > { %1271 = vmatprep.mubr.msk.bf16.mxu0 %vm367_vm0, %v1323_v16  ;;  %1287 = vmatprep.mubr.msk.bf16.mxu1 %vm367_vm0, %v1325_v17 }
  0x2e   : > { %1272 = vmatmul.mubr.msk.bf16.gmra.mrb[12].mxu0 %vm367_vm0, %v1324_v18  ;;  %1288 = vmatmul.mubr.msk.bf16.gmra.mrb[12].mxu1 %vm367_vm0, %v1326_v19 }
  0xe9   : > { %v1261_v21 = vpop.f32.mrb[0].mxu0  ;;  %v1277_v22 = vpop.f32.mrb[0].mxu1 }
  0xea   : > { %v459_v23 = vadd.f32 %v1261_v21, %v1489_v20  ;;  %v523_v24 = vadd.f32 %v1277_v22, %v1489_v20  ;;  %v450_v25 = vpop.f32.mrb[1].mxu0  ;;  %v514_v26 = vpop.f32.mrb[1].mxu1 }
  0xeb   : > { %v451_v27 = vadd.f32 %v1489_v20, %v450_v25  ;;  %v515_v28 = vadd.f32 %v1489_v20, %v514_v26  ;;  %v1262_v29 = vpop.f32.mrb[2].mxu0  ;;  %v1278_v30 = vpop.f32.mrb[2].mxu1 }
  0xec   : > { %v1501_v31 = vmax.f32 %v459_v23, 0.0  ;;  %v1503_v32 = vmax.f32 %v523_v24, 0.0  ;;  %v462_v33 = vadd.f32 %v1262_v29, %v1489_v20  ;;  %v526_v34 = vadd.f32 %v1278_v30, %v1489_v20  ;;  %v453_v35 = vpop.f32.mrb[3].mxu0  ;;  %v517_v36 = vpop.f32.mrb[3].mxu1 }
  0xed   : > { %v1507_v37 = vmax.f32 %v451_v27, 0.0  ;;  %v1509_v38 = vmax.f32 %v515_v28, 0.0  ;;  %v454_v39 = vadd.f32 %v1489_v20, %v453_v35  ;;  %v518_v40 = vadd.f32 %v1489_v20, %v517_v36 }
  0xee   : > { %612 = vst.msk [vmem:[%s1497_s9 + $0x10] sm:$0xff] %vm609_vm1, %v1501_v31  ;;  %628 = vst.msk [vmem:[%s1497_s9 + $0x90] sm:$0xff] %vm609_vm1, %v1503_v32  ;;  %v1519_v41 = vmax.f32 %v462_v33, 0.0  ;;  %v1521_v42 = vmax.f32 %v526_v34, 0.0  ;;  %v660_v43 = vmul.f32 %v1503_v32, %v1503_v32  ;;  %v644_v44 = vmul.f32 %v1501_v31, %v1501_v31 }
  0xef   : > { %610 = vst.msk [vmem:[%s1497_s9] sm:$0xff] %vm609_vm1, %v1507_v37  ;;  %626 = vst.msk [vmem:[%s1497_s9 + $0x80] sm:$0xff] %vm609_vm1, %v1509_v38  ;;  %v1533_v45 = vmax.f32 %v454_v39, 0.0  ;;  %v1535_v46 = vmax.f32 %v518_v40, 0.0  ;;  %v642_v47 = vmul.f32 %v1507_v37, %v1507_v37  ;;  %v658_v58 = vmul.f32 %v1509_v38, %v1509_v38 }
  0xf0   : > { %613 = vst.msk [vmem:[%s1497_s9 + $0x18] sm:$0xff] %vm609_vm1, %v1519_v41  ;;  %629 = vst.msk [vmem:[%s1497_s9 + $0x98] sm:$0xff] %vm609_vm1, %v1521_v42  ;;  %v728_v48 = vsel %vm609_vm1, %v660_v43, 0.0  ;;  %v680_v49 = vsel %vm609_vm1, %v644_v44, 0.0  ;;  %v645_v50 = vmul.f32 %v1519_v41, %v1519_v41  ;;  %v661_v57 = vmul.f32 %v1521_v42, %v1521_v42 }
  0xf1   : > { %611 = vst.msk [vmem:[%s1497_s9 + $0x8] sm:$0xff] %vm609_vm1, %v1533_v45  ;;  %627 = vst.msk [vmem:[%s1497_s9 + $0x88] sm:$0xff] %vm609_vm1, %v1535_v46  ;;  %729 = vadd.xlane.f32.xlu0 %v728_v48  ;;  %681 = vadd.xlane.f32.xlu1 %v680_v49  ;;  %v1265_v51 = vpop.f32.mrb[4].mxu0  ;;  %v1281_v52 = vpop.f32.mrb[4].mxu1  ;;  %v674_v61 = vsel %vm609_vm1, %v642_v47, 0.0  ;;  %v659_v13 = vmul.f32 %v1535_v46, %v1535_v46  ;;  %v643_v14 = vmul.f32 %v1533_v45, %v1533_v45 }
  0xf2   : > { %v475_v53 = vadd.f32 %v1265_v51, %v1489_v20  ;;  %v466_v54 = vpop.f32.mrb[5].mxu0  ;;  %v539_v55 = vadd.f32 %v1281_v52, %v1489_v20  ;;  %v530_v56 = vpop.f32.mrb[5].mxu1  ;;  %v683_v59 = vsel %vm609_vm1, %v645_v50, 0.0  ;;  %v731_v17 = vsel %vm609_vm1, %v661_v57, 0.0 }
  0xf3   : > { %v467_v60 = vadd.f32 %v1489_v20, %v466_v54  ;;  %v1266_v62 = vpop.f32.mrb[6].mxu0  ;;  %v531_v63 = vadd.f32 %v1489_v20, %v530_v56  ;;  %v1282_v0 = vpop.f32.mrb[6].mxu1  ;;  %v722_v18 = vsel %vm609_vm1, %v658_v58, 0.0  ;;  %v725_v22 = vsel %vm609_vm1, %v659_v13, 0.0 }
  0xf4   : > { %v1565_v1 = vmax.f32 %v475_v53, 0.0  ;;  %v478_v2 = vadd.f32 %v1266_v62, %v1489_v20  ;;  %v469_v3 = vpop.f32.mrb[7].mxu0  ;;  %v1568_v4 = vmax.f32 %v539_v55, 0.0  ;;  %v542_v5 = vadd.f32 %v1282_v0, %v1489_v20  ;;  %v533_v6 = vpop.f32.mrb[7].mxu1 }
  0xf5   : > { %684 = vadd.xlane.f32.xlu1 %v683_v59  ;;  %v1571_v7 = vmax.f32 %v467_v60, 0.0  ;;  %675 = vadd.xlane.f32.xlu0 %v674_v61  ;;  %v470_v8 = vadd.f32 %v1489_v20, %v469_v3  ;;  %v1574_v9 = vmax.f32 %v531_v63, 0.0  ;;  %v534_v10 = vadd.f32 %v1489_v20, %v533_v6 }
  0xf6   : > { %616 = vst.msk [vmem:[%s1497_s9 + $0x30] sm:$0xff] %vm609_vm1, %v1565_v1  ;;  %v1580_v11 = vmax.f32 %v478_v2, 0.0  ;;  %632 = vst.msk [vmem:[%s1497_s9 + $0xb0] sm:$0xff] %vm609_vm1, %v1568_v4  ;;  %v1585_v12 = vmax.f32 %v542_v5, 0.0  ;;  %v677_v23 = vsel %vm609_vm1, %v643_v14, 0.0  ;;  %v648_v29 = vmul.f32 %v1565_v1, %v1565_v1 }
  0xf7   : > { %614 = vst.msk [vmem:[%s1497_s9 + $0x20] sm:$0xff] %vm609_vm1, %v1571_v7  ;;  %v1594_v15 = vmax.f32 %v470_v8, 0.0  ;;  %630 = vst.msk [vmem:[%s1497_s9 + $0xa0] sm:$0xff] %vm609_vm1, %v1574_v9  ;;  %v1599_v16 = vmax.f32 %v534_v10, 0.0  ;;  %v664_v52 = vmul.f32 %v1568_v4, %v1568_v4  ;;  %v646_v63 = vmul.f32 %v1571_v7, %v1571_v7 }
  0xf8   : > { %617 = vst.msk [vmem:[%s1497_s9 + $0x38] sm:$0xff] %vm609_vm1, %v1580_v11  ;;  %633 = vst.msk [vmem:[%s1497_s9 + $0xb8] sm:$0xff] %vm609_vm1, %v1585_v12  ;;  %v649_v28 = vmul.f32 %v1580_v11, %v1580_v11  ;;  %v665_v55 = vmul.f32 %v1585_v12, %v1585_v12  ;;  %v692_v59 = vsel %vm609_vm1, %v648_v29, 0.0 }
  0xf9   : > { %615 = vst.msk [vmem:[%s1497_s9 + $0x28] sm:$0xff] %vm609_vm1, %v1594_v15  ;;  %732 = vadd.xlane.f32.xlu1 %v731_v17  ;;  %723 = vadd.xlane.f32.xlu0 %v722_v18  ;;  %631 = vst.msk [vmem:[%s1497_s9 + $0xa8] sm:$0xff] %vm609_vm1, %v1599_v16  ;;  %v1269_v19 = vpop.f32.mrb[8].mxu0  ;;  %v1285_v21 = vpop.f32.mrb[8].mxu1  ;;  %v740_v62 = vsel %vm609_vm1, %v664_v52, 0.0  ;;  %v647_v8 = vmul.f32 %v1594_v15, %v1594_v15 }
  0xfa   : > { %v491_v24 = vadd.f32 %v1269_v19, %v1489_v20  ;;  %v482_v25 = vpop.f32.mrb[9].mxu0  ;;  %v555_v26 = vadd.f32 %v1285_v21, %v1489_v20  ;;  %v546_v27 = vpop.f32.mrb[9].mxu1  ;;  %v695_v58 = vsel %vm609_vm1, %v649_v28, 0.0  ;;  %v743_v6 = vsel %vm609_vm1, %v665_v55, 0.0 }
  0xfb   : > { %v483_v30 = vadd.f32 %v1489_v20, %v482_v25  ;;  %v1270_v33 = vpop.f32.mrb[10].mxu0  ;;  %v547_v34 = vadd.f32 %v1489_v20, %v546_v27  ;;  %v1286_v35 = vpop.f32.mrb[10].mxu1 }
  0xfc   : > { %v1625_v36 = vmax.f32 %v491_v24, 0.0  ;;  %v494_v39 = vadd.f32 %v1270_v33, %v1489_v20  ;;  %v485_v40 = vpop.f32.mrb[11].mxu0  ;;  %v1628_v43 = vmax.f32 %v555_v26, 0.0  ;;  %v558_v44 = vadd.f32 %v1286_v35, %v1489_v20  ;;  %v549_v47 = vpop.f32.mrb[11].mxu1 }
  0xfd   : > { %726 = vadd.xlane.f32.xlu1 %v725_v22  ;;  %678 = vadd.xlane.f32.xlu0 %v677_v23  ;;  %v1631_v48 = vmax.f32 %v483_v30, 0.0  ;;  %v486_v49 = vadd.f32 %v1489_v20, %v485_v40  ;;  %v1634_v50 = vmax.f32 %v547_v34, 0.0  ;;  %v550_v51 = vadd.f32 %v1489_v20, %v549_v47 }
  0xfe   : > { %620 = vst.msk [vmem:[%s1497_s9 + $0x50] sm:$0xff] %vm609_vm1, %v1625_v36  ;;  %v1642_v53 = vmax.f32 %v494_v39, 0.0  ;;  %636 = vst.msk [vmem:[%s1497_s9 + $0xd0] sm:$0xff] %vm609_vm1, %v1628_v43  ;;  %v1647_v54 = vmax.f32 %v558_v44, 0.0  ;;  %v689_v34 = vsel %vm609_vm1, %v647_v8, 0.0  ;;  %v686_v35 = vsel %vm609_vm1, %v646_v63, 0.0 }
  0xff   : > { %618 = vst.msk [vmem:[%s1497_s9 + $0x40] sm:$0xff] %vm609_vm1, %v1631_v48  ;;  %v1654_v56 = vmax.f32 %v486_v49, 0.0  ;;  %634 = vst.msk [vmem:[%s1497_s9 + $0xc0] sm:$0xff] %vm609_vm1, %v1634_v50  ;;  %v1659_v57 = vmax.f32 %v550_v51, 0.0  ;;  %v663_v39 = vmul.f32 %v1599_v16, %v1599_v16  ;;  %v662_v40 = vmul.f32 %v1574_v9, %v1574_v9 }
 0x100   : > { %621 = vst.msk [vmem:[%s1497_s9 + $0x58] sm:$0xff] %vm609_vm1, %v1642_v53  ;;  %637 = vst.msk [vmem:[%s1497_s9 + $0xd8] sm:$0xff] %vm609_vm1, %v1647_v54  ;;  %v653_v49 = vmul.f32 %v1642_v53, %v1642_v53  ;;  %v652_v51 = vmul.f32 %v1625_v36, %v1625_v36  ;;  %v650_v63 = vmul.f32 %v1631_v48, %v1631_v48 }
 0x101   : > { %696 = vadd.xlane.f32.xlu1 %v695_v58  ;;  %693 = vadd.xlane.f32.xlu0 %v692_v59  ;;  %619 = vst.msk [vmem:[%s1497_s9 + $0x48] sm:$0xff] %vm609_vm1, %v1654_v56  ;;  %635 = vst.msk [vmem:[%s1497_s9 + $0xc8] sm:$0xff] %vm609_vm1, %v1659_v57  ;;  %v1273_v60 = vpop.f32.mrb[12].mxu0  ;;  %v1289_v61 = vpop.f32.mrb[12].mxu1  ;;  %v737_v44 = vsel %vm609_vm1, %v663_v39, 0.0  ;;  %v734_v47 = vsel %vm609_vm1, %v662_v40, 0.0  ;;  %v669_v58 = vmul.f32 %v1647_v54, %v1647_v54 }
 0x102   : > { %v507_v0 = vadd.f32 %v1273_v60, %v1489_v20  ;;  %v498_v2 = vpop.f32.mrb[13].mxu0  ;;  %v571_v3 = vadd.f32 %v1289_v61, %v1489_v20  ;;  %v562_v5 = vpop.f32.mrb[13].mxu1  ;;  %v707_v52 = vsel %vm609_vm1, %v653_v49, 0.0  ;;  %v704_v55 = vsel %vm609_vm1, %v652_v51, 0.0 }
 0x103   : > { %v499_v10 = vadd.f32 %v1489_v20, %v498_v2  ;;  %v1274_v13 = vpop.f32.mrb[14].mxu0  ;;  %v563_v14 = vadd.f32 %v1489_v20, %v562_v5  ;;  %v1290_v17 = vpop.f32.mrb[14].mxu1  ;;  %v668_v59 = vmul.f32 %v1628_v43, %v1628_v43  ;;  %v755_v60 = vsel %vm609_vm1, %v669_v58, 0.0 }
 0x104   : > { %v1685_v18 = vmax.f32 %v507_v0, 0.0  ;;  %v510_v19 = vadd.f32 %v1274_v13, %v1489_v20  ;;  %v501_v21 = vpop.f32.mrb[15].mxu0  ;;  %v1688_v22 = vmax.f32 %v571_v3, 0.0  ;;  %v574_v23 = vadd.f32 %v1290_v17, %v1489_v20  ;;  %v565_v24 = vpop.f32.mrb[15].mxu1 }
 0x105   : > { %744 = vadd.xlane.f32.xlu1 %v743_v6  ;;  %741 = vadd.xlane.f32.xlu0 %v740_v62  ;;  %v1691_v25 = vmax.f32 %v499_v10, 0.0  ;;  %v502_v26 = vadd.f32 %v1489_v20, %v501_v21  ;;  %v1694_v27 = vmax.f32 %v563_v14, 0.0  ;;  %v566_v28 = vadd.f32 %v1489_v20, %v565_v24 }
 0x106   : > { %624 = vst.msk [vmem:[%s1497_s9 + $0x70] sm:$0xff] %vm609_vm1, %v1685_v18  ;;  %v1700_v29 = vmax.f32 %v510_v19, 0.0  ;;  %640 = vst.msk [vmem:[%s1497_s9 + $0xf0] sm:$0xff] %vm609_vm1, %v1688_v22  ;;  %v1705_v30 = vmax.f32 %v574_v23, 0.0  ;;  %v752_v61 = vsel %vm609_vm1, %v668_v59, 0.0  ;;  %v651_v62 = vmul.f32 %v1654_v56, %v1654_v56 }
 0x107   : > { %622 = vst.msk [vmem:[%s1497_s9 + $0x60] sm:$0xff] %vm609_vm1, %v1691_v25  ;;  %v1710_v33 = vmax.f32 %v502_v26, 0.0  ;;  %638 = vst.msk [vmem:[%s1497_s9 + $0xe0] sm:$0xff] %vm609_vm1, %v1694_v27  ;;  %v1715_v20 = vmax.f32 %v566_v28, 0.0  ;;  %v698_v2 = vsel %vm609_vm1, %v650_v63, 0.0  ;;  %v667_v3 = vmul.f32 %v1659_v57, %v1659_v57 }
 0x108   : > { %625 = vst.msk [vmem:[%s1497_s9 + $0x78] sm:$0xff] %vm609_vm1, %v1700_v29  ;;  %641 = vst.msk [vmem:[%s1497_s9 + $0xf8] sm:$0xff] %vm609_vm1, %v1705_v30  ;;  %v701_v0 = vsel %vm609_vm1, %v651_v62, 0.0  ;;  %v666_v5 = vmul.f32 %v1634_v50, %v1634_v50  ;;  %v657_v10 = vmul.f32 %v1700_v29, %v1700_v29  ;;  %v656_v13 = vmul.f32 %v1685_v18, %v1685_v18 }
 0x109   : > { %690 = vadd.xlane.f32.xlu1 %v689_v34  ;;  %687 = vadd.xlane.f32.xlu0 %v686_v35  ;;  %623 = vst.msk [vmem:[%s1497_s9 + $0x68] sm:$0xff] %vm609_vm1, %v1710_v33  ;;  %639 = vst.msk [vmem:[%s1497_s9 + $0xe8] sm:$0xff] %vm609_vm1, %v1715_v20  ;;  %v749_v6 = vsel %vm609_vm1, %v667_v3, 0.0  ;;  %v655_v19 = vmul.f32 %v1710_v33, %v1710_v33  ;;  %v654_v21 = vmul.f32 %v1691_v25, %v1691_v25 }
 0x10a   : > { %v746_v8 = vsel %vm609_vm1, %v666_v5, 0.0  ;;  %v719_v14 = vsel %vm609_vm1, %v657_v10, 0.0  ;;  %v716_v17 = vsel %vm609_vm1, %v656_v13, 0.0  ;;  %v671_v26 = vmul.f32 %v1715_v20, %v1715_v20 }
 0x10b   : > { %v713_v23 = vsel %vm609_vm1, %v655_v19, 0.0  ;;  %v710_v24 = vsel %vm609_vm1, %v654_v21, 0.0  ;;  %v670_v28 = vmul.f32 %v1694_v27, %v1694_v27  ;;  %v673_v39 = vmul.f32 %v1705_v30, %v1705_v30 }
 0x10c   : > { %v761_v34 = vsel %vm609_vm1, %v671_v26, 0.0  ;;  %v672_v40 = vmul.f32 %v1688_v22, %v1688_v22 }
 0x10d   : > { %738 = vadd.xlane.f32.xlu1 %v737_v44  ;;  %735 = vadd.xlane.f32.xlu0 %v734_v47  ;;  %v758_v35 = vsel %vm609_vm1, %v670_v28, 0.0  ;;  %v767_v44 = vsel %vm609_vm1, %v673_v39, 0.0 }
 0x10e   : > { %v764_v47 = vsel %vm609_vm1, %v672_v40, 0.0 }
 0x111   : > { %708 = vadd.xlane.f32.xlu1 %v707_v52  ;;  %705 = vadd.xlane.f32.xlu0 %v704_v55 }
 0x115   : > { %756 = vadd.xlane.f32.xlu1 %v755_v60  ;;  %753 = vadd.xlane.f32.xlu0 %v752_v61 }
 0x119   : > { %702 = vadd.xlane.f32.xlu1 %v701_v0  ;;  %699 = vadd.xlane.f32.xlu0 %v698_v2 }
 0x11d   : > { %750 = vadd.xlane.f32.xlu1 %v749_v6  ;;  %747 = vadd.xlane.f32.xlu0 %v746_v8 }
 0x121   : > { %720 = vadd.xlane.f32.xlu1 %v719_v14  ;;  %717 = vadd.xlane.f32.xlu0 %v716_v17 }
 0x125   : > { %714 = vadd.xlane.f32.xlu1 %v713_v23  ;;  %711 = vadd.xlane.f32.xlu0 %v710_v24 }
 0x129   : > { %762 = vadd.xlane.f32.xlu1 %v761_v34  ;;  %759 = vadd.xlane.f32.xlu0 %v758_v35 }
 0x12d   : > { %768 = vadd.xlane.f32.xlu1 %v767_v44  ;;  %765 = vadd.xlane.f32.xlu0 %v764_v47 }
 0x17e   : > { %v730_v49 = vpop.xlane.xlu0 %729  ;;  %v682_v51 = vpop.xlane.xlu1 %681 }
 0x17f   : > { %v788_v52 = vmax.f32 %v730_v49, 1e-24  ;;  %v772_v55 = vmax.f32 %v682_v51, 1e-24 }
 0x181   : > { %1327 = vrsqrt.f32 %v788_v52 }
 0x182   : > { %1329 = vrsqrt.f32 %v772_v55  ;;  %v685_v58 = vpop.xlane.xlu1 %684  ;;  %v676_v59 = vpop.xlane.xlu0 %675 }
 0x183   : > { %v773_v60 = vmax.f32 %v685_v58, 1e-24  ;;  %v770_v61 = vmax.f32 %v676_v59, 1e-24 }
 0x185   : > { %1331 = vrsqrt.f32 %v773_v60 }
 0x186   : > { %1333 = vrsqrt.f32 %v770_v61  ;;  %v733_v62 = vpop.xlane.xlu1 %732  ;;  %v724_v63 = vpop.xlane.xlu0 %723 }
 0x187   : > { %v789_v0 = vmax.f32 %v733_v62, 1e-24  ;;  %v786_v2 = vmax.f32 %v724_v63, 1e-24 }
 0x189   : > { %1335 = vrsqrt.f32 %v789_v0 }
 0x18a   : > { %1337 = vrsqrt.f32 %v786_v2  ;;  %v727_v3 = vpop.xlane.xlu1 %726  ;;  %v679_v5 = vpop.xlane.xlu0 %678 }
 0x18b   : > { %v1328_v6 = vpop.eup %1327  ;;  %v787_v8 = vmax.f32 %v727_v3, 1e-24  ;;  %v771_v10 = vmax.f32 %v679_v5, 1e-24 }
 0x18c   : > { %v1330_v13 = vpop.eup %1329  ;;  %v852_v14 = vmul.f32 %v1328_v6, %v1503_v32 }
 0x18d   : > { %v836_v17 = vmul.f32 %v1330_v13, %v1501_v31  ;;  %1339 = vrsqrt.f32 %v787_v8 }
 0x18e   : > { %v1217_v19 = vpack.c.bf16 %v852_v14, %v852_v14  ;;  %1341 = vrsqrt.f32 %v771_v10  ;;  %v697_v21 = vpop.xlane.xlu1 %696  ;;  %v694_v23 = vpop.xlane.xlu0 %693 }
 0x18f   : > { %v1332_v24 = vpop.eup %1331  ;;  %v1201_v26 = vpack.c.bf16 %v836_v17, %v836_v17  ;;  %v777_v28 = vmax.f32 %v697_v21, 1e-24  ;;  %v776_v32 = vmax.f32 %v694_v23, 1e-24 }
 0x190   : > { %v1334_v34 = vpop.eup %1333  ;;  %1013 = vst.msk [vmem:[%s1791_s12 + $0x48] sm:$0xf] %vm994_vm2, %v1217_v19  ;;  %v837_v35 = vmul.f32 %v1332_v24, %v1519_v41 }
 0x191   : > { %997 = vst.msk [vmem:[%s1791_s12 + $0x8] sm:$0xf] %vm994_vm2, %v1201_v26  ;;  %v834_v31 = vmul.f32 %v1334_v34, %v1507_v37  ;;  %1343 = vrsqrt.f32 %v777_v28 }
 0x192   : > { %v1202_v39 = vpack.c.bf16 %v837_v35, %v837_v35  ;;  %1345 = vrsqrt.f32 %v776_v32  ;;  %v745_v40 = vpop.xlane.xlu1 %744  ;;  %v742_v44 = vpop.xlane.xlu0 %741 }
 0x193   : > { %v1336_v47 = vpop.eup %1335  ;;  %v1199_v49 = vpack.c.bf16 %v834_v31, %v834_v31  ;;  %v793_v51 = vmax.f32 %v745_v40, 1e-24  ;;  %v792_v52 = vmax.f32 %v742_v44, 1e-24 }
 0x194   : > { %v1338_v55 = vpop.eup %1337  ;;  %998 = vst.msk [vmem:[%s1791_s12 + $0xc] sm:$0xf] %vm994_vm2, %v1202_v39  ;;  %v853_v41 = vmul.f32 %v1336_v47, %v1521_v42 }
 0x195   : > { %995 = vst.msk [vmem:[%s1791_s12] sm:$0xf] %vm994_vm2, %v1199_v49  ;;  %v850_v37 = vmul.f32 %v1338_v55, %v1509_v38  ;;  %1347 = vrsqrt.f32 %v793_v51 }
 0x196   : > { %v1218_v58 = vpack.c.bf16 %v853_v41, %v853_v41  ;;  %1349 = vrsqrt.f32 %v792_v52  ;;  %v691_v59 = vpop.xlane.xlu1 %690  ;;  %v688_v60 = vpop.xlane.xlu0 %687 }
 0x197   : > { %v1340_v61 = vpop.eup %1339  ;;  %v1215_v62 = vpack.c.bf16 %v850_v37, %v850_v37  ;;  %v775_v63 = vmax.f32 %v691_v59, 1e-24  ;;  %v774_v0 = vmax.f32 %v688_v60, 1e-24 }
 0x198   : > { %v1342_v2 = vpop.eup %1341  ;;  %1014 = vst.msk [vmem:[%s1791_s12 + $0x4c] sm:$0xf] %vm994_vm2, %v1218_v58  ;;  %v851_v42 = vmul.f32 %v1340_v61, %v1535_v46 }
 0x199   : > { %1011 = vst.msk [vmem:[%s1791_s12 + $0x40] sm:$0xf] %vm994_vm2, %v1215_v62  ;;  %v835_v38 = vmul.f32 %v1342_v2, %v1533_v45  ;;  %1351 = vrsqrt.f32 %v775_v63 }
 0x19a   : > { %v1216_v3 = vpack.c.bf16 %v851_v42, %v851_v42  ;;  %1353 = vrsqrt.f32 %v774_v0  ;;  %v739_v5 = vpop.xlane.xlu1 %738  ;;  %v736_v6 = vpop.xlane.xlu0 %735 }
 0x19b   : > { %v1344_v8 = vpop.eup %1343  ;;  %v1200_v10 = vpack.c.bf16 %v835_v38, %v835_v38  ;;  %v791_v13 = vmax.f32 %v739_v5, 1e-24  ;;  %v790_v14 = vmax.f32 %v736_v6, 1e-24 }
 0x19c   : > { %v1346_v17 = vpop.eup %1345  ;;  %1012 = vst.msk [vmem:[%s1791_s12 + $0x44] sm:$0xf] %vm994_vm2, %v1216_v3  ;;  %v841_v46 = vmul.f32 %v1344_v8, %v1580_v11 }
 0x19d   : > { %996 = vst.msk [vmem:[%s1791_s12 + $0x4] sm:$0xf] %vm994_vm2, %v1200_v10  ;;  %v840_v45 = vmul.f32 %v1346_v17, %v1565_v1  ;;  %1355 = vrsqrt.f32 %v791_v13 }
 0x19e   : > { %v1206_v19 = vpack.c.bf16 %v841_v46, %v841_v46  ;;  %1357 = vrsqrt.f32 %v790_v14  ;;  %v709_v21 = vpop.xlane.xlu1 %708  ;;  %v706_v23 = vpop.xlane.xlu0 %705 }
 0x19f   : > { %v1348_v24 = vpop.eup %1347  ;;  %v1205_v26 = vpack.c.bf16 %v840_v45, %v840_v45  ;;  %v781_v28 = vmax.f32 %v709_v21, 1e-24  ;;  %v780_v32 = vmax.f32 %v706_v23, 1e-24 }
 0x1a0   : > { %v1350_v34 = vpop.eup %1349  ;;  %1002 = vst.msk [vmem:[%s1791_s12 + $0x1c] sm:$0xf] %vm994_vm2, %v1206_v19  ;;  %v857_v11 = vmul.f32 %v1348_v24, %v1585_v12 }
 0x1a1   : > { %1001 = vst.msk [vmem:[%s1791_s12 + $0x18] sm:$0xf] %vm994_vm2, %v1205_v26  ;;  %v856_v1 = vmul.f32 %v1350_v34, %v1568_v4  ;;  %1359 = vrsqrt.f32 %v781_v28 }
 0x1a2   : > { %v1222_v35 = vpack.c.bf16 %v857_v11, %v857_v11  ;;  %1361 = vrsqrt.f32 %v780_v32  ;;  %v757_v31 = vpop.xlane.xlu1 %756  ;;  %v754_v39 = vpop.xlane.xlu0 %753 }
 0x1a3   : > { %v1352_v40 = vpop.eup %1351  ;;  %v1221_v44 = vpack.c.bf16 %v856_v1, %v856_v1  ;;  %v797_v47 = vmax.f32 %v757_v31, 1e-24  ;;  %v796_v49 = vmax.f32 %v754_v39, 1e-24 }
 0x1a4   : > { %v1354_v51 = vpop.eup %1353  ;;  %1018 = vst.msk [vmem:[%s1791_s12 + $0x5c] sm:$0xf] %vm994_vm2, %v1222_v35  ;;  %v839_v12 = vmul.f32 %v1352_v40, %v1594_v15 }
 0x1a5   : > { %1017 = vst.msk [vmem:[%s1791_s12 + $0x58] sm:$0xf] %vm994_vm2, %v1221_v44  ;;  %v838_v4 = vmul.f32 %v1354_v51, %v1571_v7  ;;  %1363 = vrsqrt.f32 %v797_v47 }
 0x1a6   : > { %v1204_v52 = vpack.c.bf16 %v839_v12, %v839_v12  ;;  %1365 = vrsqrt.f32 %v796_v49  ;;  %v703_v55 = vpop.xlane.xlu1 %702  ;;  %v700_v41 = vpop.xlane.xlu0 %699 }
 0x1a7   : > { %v1356_v37 = vpop.eup %1355  ;;  %v1203_v58 = vpack.c.bf16 %v838_v4, %v838_v4  ;;  %v779_v59 = vmax.f32 %v703_v55, 1e-24  ;;  %v778_v60 = vmax.f32 %v700_v41, 1e-24 }
 0x1a8   : > { %v1358_v61 = vpop.eup %1357  ;;  %1000 = vst.msk [vmem:[%s1791_s12 + $0x14] sm:$0xf] %vm994_vm2, %v1204_v52  ;;  %v855_v15 = vmul.f32 %v1356_v37, %v1599_v16 }
 0x1a9   : > { %999 = vst.msk [vmem:[%s1791_s12 + $0x10] sm:$0xf] %vm994_vm2, %v1203_v58  ;;  %v854_v7 = vmul.f32 %v1358_v61, %v1574_v9  ;;  %1367 = vrsqrt.f32 %v779_v59 }
 0x1aa   : > { %v1220_v62 = vpack.c.bf16 %v855_v15, %v855_v15  ;;  %1369 = vrsqrt.f32 %v778_v60  ;;  %v751_v63 = vpop.xlane.xlu1 %750  ;;  %v748_v0 = vpop.xlane.xlu0 %747 }
 0x1ab   : > { %v1360_v2 = vpop.eup %1359  ;;  %v1219_v42 = vpack.c.bf16 %v854_v7, %v854_v7  ;;  %v795_v38 = vmax.f32 %v751_v63, 1e-24  ;;  %v794_v3 = vmax.f32 %v748_v0, 1e-24 }
 0x1ac   : > { %v1362_v5 = vpop.eup %1361  ;;  %1016 = vst.msk [vmem:[%s1791_s12 + $0x54] sm:$0xf] %vm994_vm2, %v1220_v62  ;;  %v845_v16 = vmul.f32 %v1360_v2, %v1642_v53 }
 0x1ad   : > { %1015 = vst.msk [vmem:[%s1791_s12 + $0x50] sm:$0xf] %vm994_vm2, %v1219_v42  ;;  %v844_v9 = vmul.f32 %v1362_v5, %v1625_v36  ;;  %1371 = vrsqrt.f32 %v795_v38 }
 0x1ae   : > { %v1210_v6 = vpack.c.bf16 %v845_v16, %v845_v16  ;;  %1373 = vrsqrt.f32 %v794_v3  ;;  %v721_v8 = vpop.xlane.xlu1 %720  ;;  %v718_v10 = vpop.xlane.xlu0 %717 }
 0x1af   : > { %v1364_v13 = vpop.eup %1363  ;;  %v1209_v14 = vpack.c.bf16 %v844_v9, %v844_v9  ;;  %v785_v17 = vmax.f32 %v721_v8, 1e-24  ;;  %v784_v46 = vmax.f32 %v718_v10, 1e-24 }
 0x1b0   : > { %v1366_v45 = vpop.eup %1365  ;;  %1006 = vst.msk [vmem:[%s1791_s12 + $0x2c] sm:$0xf] %vm994_vm2, %v1210_v6  ;;  %v861_v53 = vmul.f32 %v1364_v13, %v1647_v54 }
 0x1b1   : > { %1005 = vst.msk [vmem:[%s1791_s12 + $0x28] sm:$0xf] %vm994_vm2, %v1209_v14  ;;  %v860_v36 = vmul.f32 %v1366_v45, %v1628_v43  ;;  %1375 = vrsqrt.f32 %v785_v17 }
 0x1b2   : > { %v1226_v19 = vpack.c.bf16 %v861_v53, %v861_v53  ;;  %1377 = vrsqrt.f32 %v784_v46  ;;  %v715_v21 = vpop.xlane.xlu1 %714  ;;  %v712_v23 = vpop.xlane.xlu0 %711 }
 0x1b3   : > { %v1368_v24 = vpop.eup %1367  ;;  %v1225_v26 = vpack.c.bf16 %v860_v36, %v860_v36  ;;  %v783_v28 = vmax.f32 %v715_v21, 1e-24  ;;  %v782_v32 = vmax.f32 %v712_v23, 1e-24 }
 0x1b4   : > { %v1370_v34 = vpop.eup %1369  ;;  %1022 = vst.msk [vmem:[%s1791_s12 + $0x6c] sm:$0xf] %vm994_vm2, %v1226_v19  ;;  %v843_v54 = vmul.f32 %v1368_v24, %v1654_v56 }
 0x1b5   : > { %1021 = vst.msk [vmem:[%s1791_s12 + $0x68] sm:$0xf] %vm994_vm2, %v1225_v26  ;;  %v842_v43 = vmul.f32 %v1370_v34, %v1631_v48  ;;  %1379 = vrsqrt.f32 %v783_v28 }
 0x1b6   : > { %v1208_v11 = vpack.c.bf16 %v843_v54, %v843_v54  ;;  %1381 = vrsqrt.f32 %v782_v32  ;;  %v763_v1 = vpop.xlane.xlu1 %762  ;;  %v760_v35 = vpop.xlane.xlu0 %759 }
 0x1b7   : > { %v1372_v31 = vpop.eup %1371  ;;  %v1207_v39 = vpack.c.bf16 %v842_v43, %v842_v43  ;;  %v799_v40 = vmax.f32 %v763_v1, 1e-24  ;;  %v798_v44 = vmax.f32 %v760_v35, 1e-24 }
 0x1b8   : > { %v1374_v47 = vpop.eup %1373  ;;  %1004 = vst.msk [vmem:[%s1791_s12 + $0x24] sm:$0xf] %vm994_vm2, %v1208_v11  ;;  %v859_v56 = vmul.f32 %v1372_v31, %v1659_v57 }
 0x1b9   : > { %1003 = vst.msk [vmem:[%s1791_s12 + $0x20] sm:$0xf] %vm994_vm2, %v1207_v39  ;;  %v858_v48 = vmul.f32 %v1374_v47, %v1634_v50  ;;  %1383 = vrsqrt.f32 %v799_v40 }
 0x1ba   : > { %v1224_v49 = vpack.c.bf16 %v859_v56, %v859_v56  ;;  %1385 = vrsqrt.f32 %v798_v44  ;;  %v769_v51 = vpop.xlane.xlu1 %768  ;;  %v766_v12 = vpop.xlane.xlu0 %765 }
 0x1bb   : > { %v1376_v4 = vpop.eup %1375  ;;  %v1223_v52 = vpack.c.bf16 %v858_v48, %v858_v48  ;;  %v801_v55 = vmax.f32 %v769_v51, 1e-24  ;;  %v800_v41 = vmax.f32 %v766_v12, 1e-24 }
 0x1bc   : > { %v1378_v37 = vpop.eup %1377  ;;  %1020 = vst.msk [vmem:[%s1791_s12 + $0x64] sm:$0xf] %vm994_vm2, %v1224_v49  ;;  %v849_v57 = vmul.f32 %v1376_v4, %v1700_v29 }
 0x1bd   : > { %1019 = vst.msk [vmem:[%s1791_s12 + $0x60] sm:$0xf] %vm994_vm2, %v1223_v52  ;;  %v848_v50 = vmul.f32 %v1378_v37, %v1685_v18  ;;  %1387 = vrsqrt.f32 %v801_v55 }
 0x1be   : > { %v1214_v58 = vpack.c.bf16 %v849_v57, %v849_v57  ;;  %1389 = vrsqrt.f32 %v800_v41 }
 0x1bf   : > { %v1380_v59 = vpop.eup %1379  ;;  %v1213_v60 = vpack.c.bf16 %v848_v50, %v848_v50 }
 0x1c0   : > { %v1382_v61 = vpop.eup %1381  ;;  %1010 = vst.msk [vmem:[%s1791_s12 + $0x3c] sm:$0xf] %vm994_vm2, %v1214_v58  ;;  %v847_v15 = vmul.f32 %v1380_v59, %v1710_v33 }
 0x1c1   : > { %1009 = vst.msk [vmem:[%s1791_s12 + $0x38] sm:$0xf] %vm994_vm2, %v1213_v60  ;;  %v846_v29 = vmul.f32 %v1382_v61, %v1691_v25 }
 0x1c2   : > { %v1212_v7 = vpack.c.bf16 %v847_v15, %v847_v15 }
 0x1c3   : > { %v1384_v62 = vpop.eup %1383  ;;  %v1211_v18 = vpack.c.bf16 %v846_v29, %v846_v29 }
 0x1c4   : > { %v1386_v63 = vpop.eup %1385  ;;  %1008 = vst.msk [vmem:[%s1791_s12 + $0x34] sm:$0xf] %vm994_vm2, %v1212_v7  ;;  %v863_v0 = vmul.f32 %v1384_v62, %v1715_v20 }
 0x1c5   : > { %1007 = vst.msk [vmem:[%s1791_s12 + $0x30] sm:$0xf] %vm994_vm2, %v1211_v18  ;;  %v862_v2 = vmul.f32 %v1386_v63, %v1694_v27 }
 0x1c6   : > { %v1228_v33 = vpack.c.bf16 %v863_v0, %v863_v0 }
 0x1c7   : > { %v1388_v42 = vpop.eup %1387  ;;  %v1227_v38 = vpack.c.bf16 %v862_v2, %v862_v2 }
 0x1c8   : > { %v1390_v3 = vpop.eup %1389  ;;  %1024 = vst.msk [vmem:[%s1791_s12 + $0x74] sm:$0xf] %vm994_vm2, %v1228_v33  ;;  %v865_v25 = vmul.f32 %v1388_v42, %v1705_v30 }
 0x1c9   : > { %1023 = vst.msk [vmem:[%s1791_s12 + $0x70] sm:$0xf] %vm994_vm2, %v1227_v38  ;;  %v864_v5 = vmul.f32 %v1390_v3, %v1688_v22 }
 0x1ca   : > { %v1230_v16 = vpack.c.bf16 %v865_v25, %v865_v25 }
 0x1cb   : > { %v1229_v9 = vpack.c.bf16 %v864_v5, %v864_v5 }
 0x1cc   : > { %1026 = vst.msk [vmem:[%s1791_s12 + $0x7c] sm:$0xf] %vm994_vm2, %v1230_v16 }
 0x1cd   : > { %1025 = vst.msk [vmem:[%s1791_s12 + $0x78] sm:$0xf] %vm994_vm2, %v1229_v9 }
 0x1ce PF: > { %s15_s15 = sadd.s32 1, %s1397_s15  }
 0x1cf   : > { %p12_p4 = scmp.ge.s32.totalorder %s15_s15, 4  }
 0x1d1   :  { %14 = sbr.rel (!%p12_p4) target bundleno = 1 (0x1), region = 74 }

</bundles_post_ra>
